<compile_context>
chip_gen: v7x
topology: tpu7x:2x2x1
jax: 0.10.0
libtpu: 0.0.40
codegen_flags: <defaults>
</compile_context>

<pallas_src>
import functools

import numpy as np
import jax
import jax.numpy as jnp
from jax.experimental import pallas as pl
from jax.experimental.pallas import tpu as pltpu


# ----------------------------------------------------------------------------
# Small (but structurally faithful) front-end configuration
# ----------------------------------------------------------------------------
N_MELS = 16
SR = 2000
WIN_LENGTH = 48
HOPSIZE = 16
N_FFT = 64
FMIN = 0.0
FMAX_AUG_RANGE = 2
FMAX = SR // 2 - FMAX_AUG_RANGE // 2       # fmax=None branch
N_FREQ = N_FFT // 2 + 1                    # 33
N_FREQ_PAD = 40                            # 33 padded up to a multiple of 8 sublanes
FRAMES_PER_HOP = N_FFT // HOPSIZE          # 4 (overlap factor)


# ----------------------------------------------------------------------------
# Deterministic parameter construction (numpy, float32)
# ----------------------------------------------------------------------------
def hann_window_nonperiodic(win_length):
    n = np.arange(win_length, dtype=np.float64)
    return (0.5 - 0.5 * np.cos(2.0 * np.pi * n / (win_length - 1))).astype(np.float32)


def make_dft_weights(n_fft, win_length):
    """cos/sin DFT matrices with the (centered, zero-padded) hann window folded in."""
    win = hann_window_nonperiodic(win_length)
    pad_left = (n_fft - win_length) // 2
    win_full = np.zeros((n_fft,), dtype=np.float64)
    win_full[pad_left:pad_left + win_length] = win
    f = np.arange(N_FREQ, dtype=np.float64)[:, None]           # (n_freq, 1)
    n = np.arange(n_fft, dtype=np.float64)[None, :]             # (1, n_fft)
    ang = 2.0 * np.pi * f * n / n_fft
    wc = (np.cos(ang) * win_full[None, :]).astype(np.float32)
    ws = (-np.sin(ang) * win_full[None, :]).astype(np.float32)
    return wc, ws                                               # each (33, 64)


def kaldi_mel_banks(num_bins, window_length_padded, sample_freq, low_freq, high_freq):
    """torchaudio.compliance.kaldi.get_mel_banks (vtln_warp_factor == 1.0)."""
    num_fft_bins = window_length_padded // 2
    nyquist = 0.5 * sample_freq
    if high_freq <= 0.0:
        high_freq += nyquist
    fft_bin_width = sample_freq / window_length_padded

    def mel_scale(f):
        return 1127.0 * np.log(1.0 + f / 700.0)

    mel_low = mel_scale(low_freq)
    mel_high = mel_scale(high_freq)
    mel_delta = (mel_high - mel_low) / (num_bins + 1)

    b = np.arange(num_bins, dtype=np.float64)[:, None]
    left_mel = mel_low + b * mel_delta
    center_mel = mel_low + (b + 1.0) * mel_delta
    right_mel = mel_low + (b + 2.0) * mel_delta

    freqs = fft_bin_width * np.arange(num_fft_bins, dtype=np.float64)
    m = mel_scale(freqs)[None, :]
    up_slope = (m - left_mel) / (center_mel - left_mel)
    down_slope = (right_mel - m) / (right_mel - center_mel)
    banks = np.maximum(0.0, np.minimum(up_slope, down_slope))
    return banks.astype(np.float32)                             # (num_bins, n_fft//2)


def build_kernel_params():
    """Stacked, sublane-padded MXU weights + the un-padded reference matrices."""
    wc, ws = make_dft_weights(N_FFT, WIN_LENGTH)                # (33, 64) each
    banks = kaldi_mel_banks(N_MELS, N_FFT, float(SR), FMIN, float(FMAX))
    melb = np.pad(banks, ((0, 0), (0, 1)))                      # (16, 33): zero Nyquist col

    # Stack [cos; sin] into one MXU weight; pad each half 33 -> 40 rows (mult of 8)
    # so both slices of the matmul result start on a sublane-tile boundary.
    w_stacked = np.zeros((2 * N_FREQ_PAD, N_FFT), dtype=np.float32)    # (80, 64)
    w_stacked[:N_FREQ] = wc
    w_stacked[N_FREQ_PAD:N_FREQ_PAD + N_FREQ] = ws
    melb_pad = np.zeros((N_MELS, N_FREQ_PAD), dtype=np.float32)        # (16, 40)
    melb_pad[:, :N_FREQ] = melb
    return w_stacked, melb_pad, wc, ws, melb


# ----------------------------------------------------------------------------
# Pallas kernel: scratch-built framing + single stacked DFT matmul + mel + log
# ----------------------------------------------------------------------------
def melspec_kernel(yt_ref, w_ref, melb_ref, out_ref, frames_ref, *,
                   n_frames, batch, mxu_dtype):
    # yt_ref     : (B, 16, C)   hop-major waveform view, yt[b, r, i] = y_pad[b, 16*i + r]
    # w_ref      : (80, 64)     stacked [cos; sin] DFT weights (hann window folded in)
    # melb_ref   : (16, 40)     kaldi mel banks, zero-padded columns
    # out_ref    : (B, 16, T)   log-mel output, T lanes (multiple of 128 here)
    # frames_ref : (64, B*T)    VMEM scratch — frame matrix built in place
    T = n_frames

    # Build the frame matrix directly in the aligned VMEM scratch (no concats):
    #   frames[16*q + r, b*T + t] = y_pad[b, 16*(t+q) + r] = yt[b, r, t + q]
    # Each store target starts at (sublane, lane) = (16*q, b*T): unmasked vst.
    for b in range(batch):                        # tiny static unroll (B == 2)
        yt_b = yt_ref[b]                          # one (16, C) load per clip
        for q in range(FRAMES_PER_HOP):
            # TODO(synk): the q-shift here is a lane-realigning value slice; it
            # could be pinned on the XLU explicitly via
            # pltpu.roll(yt_b, shift=-q, axis=-1)[:, :T] if profiling shows it
            # competing for VPU load/store slots.
            frames_ref[HOPSIZE * q:HOPSIZE * (q + 1), b * T:(b + 1) * T] = (
                yt_b[:, q:q + T])

    frames = frames_ref[...]                      # (64, B*T), lane-dense
    w = w_ref[...]                                # (80, 64)
    if mxu_dtype is not None:                     # v6e/v7x production-T option
        frames = frames.astype(mxu_dtype)
        w = w.astype(mxu_dtype)

    # One MXU matmul for both real and imaginary parts (always f32 accumulate).
    z = jnp.dot(w, frames, preferred_element_type=jnp.float32)          # (80, B*T)
    re = z[:N_FREQ_PAD]                           # rows 33..39 are exactly zero
    im = z[N_FREQ_PAD:]
    power = re * re + im * im                     # f32 on the VPU (v5e-safe)

    mel = jnp.dot(melb_ref[...], power, preferred_element_type=jnp.float32)  # (16, B*T)
    logmel = (jnp.log(mel + 1e-5) + 4.5) / 5.0

    for b in range(batch):                        # full (16, 128) unmasked stores
        out_ref[b] = logmel[:, b * T:(b + 1) * T].astype(out_ref.dtype)


def melspec_pallas(yt, w_stacked, melb_pad, n_frames, *,
                   out_dtype=jnp.float32, mxu_dtype=None):
    B = yt.shape[0]
    n_mels = melb_pad.shape[0]
    kernel = functools.partial(melspec_kernel, n_frames=n_frames, batch=B,
                               mxu_dtype=mxu_dtype)

    # Advisory cost estimate so XLA can overlap this tiny custom call with the
    # surrounding pre-emphasis/pad fusion and downstream encoder work.
    flops = 2 * (w_stacked.shape[0] * w_stacked.shape[1]
                 + melb_pad.shape[0] * melb_pad.shape[1]) * B * n_frames
    out_bytes = np.dtype(out_dtype).itemsize * B * n_mels * n_frames
    bytes_accessed = 4 * (int(yt.size) + int(w_stacked.size) + int(melb_pad.size)) + out_bytes
    cost = pl.CostEstimate(flops=int(flops),
                           transcendentals=int(n_mels * B * n_frames),
                           bytes_accessed=int(bytes_accessed))

    # Single gridless invocation: total working set is a few hundred KiB, far
    # below VMEM on any generation; a grid=(B,) loop would only add the fixed
    # ~0.35 us/step pipeline overhead at this size.
    #
    # Scaling notes (per review) for production-length audio:
    #   * tile with grid=(B, T // TILE_T), TILE_T a multiple of 128.  The
    #     3-column halo on yt cannot be expressed with plain Blocked
    #     BlockSpecs (overlapping blocks) — keep yt at memory_space=pl.ANY and
    #     issue a double-buffered pltpu.make_async_copy of
    #     TILE_T + FRAMES_PER_HOP - 1 columns per step; the in-kernel frame
    #     build stays unchanged.
    #   * v7x: halve TILE_T vs v6e/v5e (64 MiB physical VMEM), set
    #     pltpu.CompilerParams(vmem_limit_bytes=...) explicitly, and mark the
    #     (B, T//TILE_T) axes "parallel" so Mosaic shards steps across the two
    #     TensorCores once per-core work >> per-step overhead.
    #   * v6e/v7x: pass mxu_dtype=jnp.bfloat16 (first matmul operands only;
    #     power/log/mel stay f32 — mandatory on v5e) and out_dtype=bf16 if the
    #     downstream ViT consumes bf16; validate with a loosened (~1e-2)
    #     tolerance against the f32 reference.
    #   * only if MXU-bound: raise K-utilization by folding G hops per RHS
    #     column with a block-shifted (G*80, 64+16*(G-1)) weight.
    return pl.pallas_call(
        kernel,
        out_shape=jax.ShapeDtypeStruct((B, n_mels, n_frames), out_dtype),
        in_specs=[
            pl.BlockSpec(memory_space=pltpu.MemorySpace.VMEM),   # yt
            pl.BlockSpec(memory_space=pltpu.MemorySpace.VMEM),   # stacked DFT weights
            pl.BlockSpec(memory_space=pltpu.MemorySpace.VMEM),   # mel banks
        ],
        out_specs=pl.BlockSpec(memory_space=pltpu.MemorySpace.VMEM),
        scratch_shapes=[pltpu.VMEM((N_FFT, B * n_frames), jnp.float32)],  # frames
        cost_estimate=cost,
    )(yt, w_stacked, melb_pad)


# ----------------------------------------------------------------------------
# Full forward (eval mode)
# ----------------------------------------------------------------------------
def augment_mel_stft_forward(x, w_stacked, melb_pad, *,
                             out_dtype=jnp.float32, mxu_dtype=None):
    B, L = x.shape
    # TODO(synk): pre-emphasis + reflect padding kept in plain JAX (single
    # waveform-sized passes, fused by XLA with the reshape/transpose below).
    # At production L, verify in the HLO that the (0,2,1) transpose fuses; if
    # it materializes its own HBM pass, move the hop-major regroup into the
    # kernel (pass y_pad with memory_space=pl.ANY, transpose per tile on XLU).
    y = x[:, 1:] - 0.97 * x[:, :-1]                              # (B, L-1)
    pad = N_FFT // 2
    y_pad = jnp.pad(y, ((0, 0), (pad, pad)), mode="reflect")     # (B, L+63)

    n_frames = 1 + (y_pad.shape[1] - N_FFT) // HOPSIZE           # torch.stft(center=True)
    n_cols = n_frames + FRAMES_PER_HOP - 1                       # T + 3
    assert n_cols * HOPSIZE <= y_pad.shape[1]

    # Compact hop-major view (waveform-sized, NOT the 4x-expanded frame tensor):
    # yt[b, r, i] = y_pad[b, 16*i + r]
    yt = jnp.transpose(
        y_pad[:, :n_cols * HOPSIZE].reshape(B, n_cols, HOPSIZE), (0, 2, 1))  # (B, 16, C)

    return melspec_pallas(yt, w_stacked, melb_pad, n_frames,
                          out_dtype=out_dtype, mxu_dtype=mxu_dtype)  # (B, n_mels, T)


# ----------------------------------------------------------------------------
# Pure-JAX reference (gather-based, un-padded/un-stacked weights)
# ----------------------------------------------------------------------------
def reference_forward(x, wc, ws, melb):
    y = x[:, 1:] - 0.97 * x[:, :-1]
    pad = N_FFT // 2
    y_pad = jnp.pad(y, ((0, 0), (pad, pad)), mode="reflect")
    n_frames = 1 + (y_pad.shape[1] - N_FFT) // HOPSIZE
    idx = HOPSIZE * jnp.arange(n_frames)[:, None] + jnp.arange(N_FFT)[None, :]
    frames_t = jnp.swapaxes(y_pad[:, idx], 1, 2)                 # (B, n_fft, T)
    re = jnp.einsum("fn,bnt->bft", wc, frames_t)
    im = jnp.einsum("fn,bnt->bft", ws, frames_t)
    power = re * re + im * im
    mel = jnp.einsum("mf,bft->bmt", melb, power)
    return (jnp.log(mel + 1e-5) + 4.5) / 5.0


if __name__ == "__main__":
    w_stacked_np, melb_pad_np, wc_np, ws_np, melb_np = build_kernel_params()
    w_stacked = jnp.asarray(w_stacked_np)                        # (80, 64)
    melb_pad = jnp.asarray(melb_pad_np)                          # (16, 40)

    # Small deterministic input waveform.  L chosen so T = 1 + (L-1)//16 = 128
    # frames per clip -> the output lane dimension is an exact vreg width.
    B, L = 2, 2048
    key = jax.random.PRNGKey(0)
    x = jax.random.normal(key, (B, L), dtype=jnp.float32)

    out = jax.block_until_ready(augment_mel_stft_forward(x, w_stacked, melb_pad))
    ref = jax.block_until_ready(
        reference_forward(x, jnp.asarray(wc_np), jnp.asarray(ws_np), jnp.asarray(melb_np)))

    assert out.shape == (B, N_MELS, 1 + (L - 1) // HOPSIZE), out.shape
    np.testing.assert_allclose(np.asarray(out), np.asarray(ref), rtol=1e-4, atol=1e-4)

    print("KERNEL_OK")
</pallas_src>

<mosaic_0001>
module attributes {stable_mosaic.version = 11 : i64} {
  func.func @melspec_kernel(%arg0: memref<2x16x131xf32, #tpu.memory_space<vmem>>, %arg1: memref<80x64xf32, #tpu.memory_space<vmem>>, %arg2: memref<16x40xf32, #tpu.memory_space<vmem>>, %arg3: memref<2x16x128xf32, #tpu.memory_space<vmem>>, %arg4: memref<64x256xf32, #tpu.memory_space<vmem>>) attributes {dimension_semantics = [], scalar_prefetch = 0 : i64, scratch_operands = 1 : i64, tpu.core_type = #tpu.core_type<tc>} {
    %c0 = arith.constant 0 : index
    %c0_0 = arith.constant 0 : index
    %c0_1 = arith.constant 0 : index
    %0 = vector.load %arg0[%c0, %c0_0, %c0_1] : memref<2x16x131xf32, #tpu.memory_space<vmem>>, vector<1x16x131xf32>
    %1 = vector.shape_cast %0 : vector<1x16x131xf32> to vector<16x131xf32>
    %2 = vector.extract_strided_slice %1 {offsets = [0, 0], sizes = [16, 128], strides = [1, 1]} : vector<16x131xf32> to vector<16x128xf32>
    %c0_2 = arith.constant 0 : index
    %c0_3 = arith.constant 0 : index
    %3 = vector.load %arg4[%c0_2, %c0_3] : memref<64x256xf32, #tpu.memory_space<vmem>>, vector<16x128xf32>
    tpu.vector_store %arg4[%c0_2, %c0_3], %2 {strides = array<i32>} : memref<64x256xf32, #tpu.memory_space<vmem>>, vector<16x128xf32>,
    %4 = vector.extract_strided_slice %1 {offsets = [0, 1], sizes = [16, 128], strides = [1, 1]} : vector<16x131xf32> to vector<16x128xf32>
    %c16 = arith.constant 16 : index
    %c0_4 = arith.constant 0 : index
    %5 = vector.load %arg4[%c16, %c0_4] : memref<64x256xf32, #tpu.memory_space<vmem>>, vector<16x128xf32>
    tpu.vector_store %arg4[%c16, %c0_4], %4 {strides = array<i32>} : memref<64x256xf32, #tpu.memory_space<vmem>>, vector<16x128xf32>,
    %6 = vector.extract_strided_slice %1 {offsets = [0, 2], sizes = [16, 128], strides = [1, 1]} : vector<16x131xf32> to vector<16x128xf32>
    %c32 = arith.constant 32 : index
    %c0_5 = arith.constant 0 : index
    %7 = vector.load %arg4[%c32, %c0_5] : memref<64x256xf32, #tpu.memory_space<vmem>>, vector<16x128xf32>
    tpu.vector_store %arg4[%c32, %c0_5], %6 {strides = array<i32>} : memref<64x256xf32, #tpu.memory_space<vmem>>, vector<16x128xf32>,
    %8 = vector.extract_strided_slice %1 {offsets = [0, 3], sizes = [16, 128], strides = [1, 1]} : vector<16x131xf32> to vector<16x128xf32>
    %c48 = arith.constant 48 : index
    %c0_6 = arith.constant 0 : index
    %9 = vector.load %arg4[%c48, %c0_6] : memref<64x256xf32, #tpu.memory_space<vmem>>, vector<16x128xf32>
    tpu.vector_store %arg4[%c48, %c0_6], %8 {strides = array<i32>} : memref<64x256xf32, #tpu.memory_space<vmem>>, vector<16x128xf32>,
    %c1 = arith.constant 1 : index
    %c0_7 = arith.constant 0 : index
    %c0_8 = arith.constant 0 : index
    %10 = vector.load %arg0[%c1, %c0_7, %c0_8] : memref<2x16x131xf32, #tpu.memory_space<vmem>>, vector<1x16x131xf32>
    %11 = vector.shape_cast %10 : vector<1x16x131xf32> to vector<16x131xf32>
    %12 = vector.extract_strided_slice %11 {offsets = [0, 0], sizes = [16, 128], strides = [1, 1]} : vector<16x131xf32> to vector<16x128xf32>
    %c0_9 = arith.constant 0 : index
    %c128 = arith.constant 128 : index
    %13 = vector.load %arg4[%c0_9, %c128] : memref<64x256xf32, #tpu.memory_space<vmem>>, vector<16x128xf32>
    tpu.vector_store %arg4[%c0_9, %c128], %12 {strides = array<i32>} : memref<64x256xf32, #tpu.memory_space<vmem>>, vector<16x128xf32>,
    %14 = vector.extract_strided_slice %11 {offsets = [0, 1], sizes = [16, 128], strides = [1, 1]} : vector<16x131xf32> to vector<16x128xf32>
    %c16_10 = arith.constant 16 : index
    %c128_11 = arith.constant 128 : index
    %15 = vector.load %arg4[%c16_10, %c128_11] : memref<64x256xf32, #tpu.memory_space<vmem>>, vector<16x128xf32>
    tpu.vector_store %arg4[%c16_10, %c128_11], %14 {strides = array<i32>} : memref<64x256xf32, #tpu.memory_space<vmem>>, vector<16x128xf32>,
    %16 = vector.extract_strided_slice %11 {offsets = [0, 2], sizes = [16, 128], strides = [1, 1]} : vector<16x131xf32> to vector<16x128xf32>
    %c32_12 = arith.constant 32 : index
    %c128_13 = arith.constant 128 : index
    %17 = vector.load %arg4[%c32_12, %c128_13] : memref<64x256xf32, #tpu.memory_space<vmem>>, vector<16x128xf32>
    tpu.vector_store %arg4[%c32_12, %c128_13], %16 {strides = array<i32>} : memref<64x256xf32, #tpu.memory_space<vmem>>, vector<16x128xf32>,
    %18 = vector.extract_strided_slice %11 {offsets = [0, 3], sizes = [16, 128], strides = [1, 1]} : vector<16x131xf32> to vector<16x128xf32>
    %c48_14 = arith.constant 48 : index
    %c128_15 = arith.constant 128 : index
    %19 = vector.load %arg4[%c48_14, %c128_15] : memref<64x256xf32, #tpu.memory_space<vmem>>, vector<16x128xf32>
    tpu.vector_store %arg4[%c48_14, %c128_15], %18 {strides = array<i32>} : memref<64x256xf32, #tpu.memory_space<vmem>>, vector<16x128xf32>,
    %c0_16 = arith.constant 0 : index
    %c0_17 = arith.constant 0 : index
    %20 = vector.load %arg4[%c0_16, %c0_17] : memref<64x256xf32, #tpu.memory_space<vmem>>, vector<64x256xf32>
    %c0_18 = arith.constant 0 : index
    %c0_19 = arith.constant 0 : index
    %21 = vector.load %arg1[%c0_18, %c0_19] : memref<80x64xf32, #tpu.memory_space<vmem>>, vector<80x64xf32>
    %cst = arith.constant dense<0.000000e+00> : vector<80x256xf32>
    %22 = tpu.matmul %21, %20, %cst {dimension_numbers = #tpu.dot_dimension_numbers<[1], [0], [0], [1], [0, 0, 1, 1], [], []>} : vector<80x64xf32>, vector<64x256xf32>, vector<80x256xf32> -> vector<80x256xf32>
    %23 = vector.extract_strided_slice %22 {offsets = [0, 0], sizes = [40, 256], strides = [1, 1]} : vector<80x256xf32> to vector<40x256xf32>
    %24 = vector.extract_strided_slice %22 {offsets = [40, 0], sizes = [40, 256], strides = [1, 1]} : vector<80x256xf32> to vector<40x256xf32>
    %25 = arith.mulf %23, %23 : vector<40x256xf32>
    %26 = arith.mulf %24, %24 : vector<40x256xf32>
    %27 = arith.addf %25, %26 : vector<40x256xf32>
    %c0_20 = arith.constant 0 : index
    %c0_21 = arith.constant 0 : index
    %28 = vector.load %arg2[%c0_20, %c0_21] : memref<16x40xf32, #tpu.memory_space<vmem>>, vector<16x40xf32>
    %cst_22 = arith.constant dense<0.000000e+00> : vector<16x256xf32>
    %29 = tpu.matmul %28, %27, %cst_22 {dimension_numbers = #tpu.dot_dimension_numbers<[1], [0], [0], [1], [0, 0, 1, 1], [], []>} : vector<16x40xf32>, vector<40x256xf32>, vector<16x256xf32> -> vector<16x256xf32>
    %cst_23 = arith.constant 9.99999974E-6 : f32
    %30 = vector.broadcast %cst_23 : f32 to vector<16x256xf32>
    %31 = arith.addf %29, %30 : vector<16x256xf32>
    %32 = math.log %31 : vector<16x256xf32>
    %cst_24 = arith.constant 4.500000e+00 : f32
    %33 = vector.broadcast %cst_24 : f32 to vector<16x256xf32>
    %34 = arith.addf %32, %33 : vector<16x256xf32>
    %cst_25 = arith.constant 5.000000e+00 : f32
    %35 = vector.broadcast %cst_25 : f32 to vector<16x256xf32>
    %36 = arith.divf %34, %35 : vector<16x256xf32>
    %37 = vector.extract_strided_slice %36 {offsets = [0, 0], sizes = [16, 128], strides = [1, 1]} : vector<16x256xf32> to vector<16x128xf32>
    %c0_26 = arith.constant 0 : index
    %c0_27 = arith.constant 0 : index
    %c0_28 = arith.constant 0 : index
    %38 = vector.load %arg3[%c0_26, %c0_27, %c0_28] : memref<2x16x128xf32, #tpu.memory_space<vmem>>, vector<1x16x128xf32>
    %39 = vector.shape_cast %38 : vector<1x16x128xf32> to vector<16x128xf32>
    %40 = vector.shape_cast %37 : vector<16x128xf32> to vector<1x16x128xf32>
    tpu.vector_store %arg3[%c0_26, %c0_27, %c0_28], %40 {strides = array<i32>} : memref<2x16x128xf32, #tpu.memory_space<vmem>>, vector<1x16x128xf32>,
    %41 = vector.extract_strided_slice %36 {offsets = [0, 128], sizes = [16, 128], strides = [1, 1]} : vector<16x256xf32> to vector<16x128xf32>
    %c1_29 = arith.constant 1 : index
    %c0_30 = arith.constant 0 : index
    %c0_31 = arith.constant 0 : index
    %42 = vector.load %arg3[%c1_29, %c0_30, %c0_31] : memref<2x16x128xf32, #tpu.memory_space<vmem>>, vector<1x16x128xf32>
    %43 = vector.shape_cast %42 : vector<1x16x128xf32> to vector<16x128xf32>
    %44 = vector.shape_cast %41 : vector<16x128xf32> to vector<1x16x128xf32>
    tpu.vector_store %arg3[%c1_29, %c0_30, %c0_31], %44 {strides = array<i32>} : memref<2x16x128xf32, #tpu.memory_space<vmem>>, vector<1x16x128xf32>,
    return
  }
}

</mosaic_0001>

<bundles_post_ra>
// kernel: tpu_custom_call.1
= control target key start
LH: loop header
LB: loop body
LE: loop exit
PB: predicated region body
PF: predicated region fallthrough
CT: control target
= control target key end

     0   :  { %s735_s0 = inlined_call_operand.vmem [shape: f32[2,16,131], index: 0, kind: input, shape index: {}]   ;;  %s736_s1 = inlined_call_operand.vmem [shape: f32[80,64], index: 1, kind: input, shape index: {}]   ;;  %s737_s2 = inlined_call_operand.vmem [shape: f32[16,40], index: 2, kind: input, shape index: {}]   ;;  %s738_s3 = inlined_call_operand.hbm [shape: f32[2,16,128], index: 3, kind: output, shape index: {}]  }
   0x1   :  { %v459_v0 = vld [vmem:[%s735_s0 + $0x20] sm:$0xff]  ;;  %v460_v1 = vld [vmem:[%s735_s0 + $0x28] sm:$0xff]  ;;  %v461_v5 = vld [vmem:[%s735_s0 + $0x30] sm:$0xff] }
   0x2   :  { %v15_v2 = vld [vmem:[%s735_s0] sm:$0xff]  ;;  %v514_v3 = vpack.i.bf16 %v460_v1, %v459_v0  ;;  %v16_v4 = vld [vmem:[%s735_s0 + $0x8] sm:$0xff]  ;;  %v462_v6 = vld [vmem:[%s735_s0 + $0x38] sm:$0xff] }
   0x3   :  { %v524_v7 = vpack.i.bf16 %v16_v4, %v15_v2  ;;  %v17_v8 = vld [vmem:[%s735_s0 + $0x10] sm:$0xff]  ;;  %v18_v9 = vld [vmem:[%s735_s0 + $0x18] sm:$0xff] }
   0x4   :  { %8 = vsyncpa [#allocation4], 0  ;;  %s606_s28 = smov 127   ;;  %v519_v10 = vpack.i.bf16 %v462_v6, %v461_v5  ;;  %v529_v11 = vpack.i.bf16 %v18_v9, %v17_v8  ;;  %v475_v12 = vpack.c.bf16 %v461_v5, %v459_v0  ;;  %v477_v13 = vpack.c.bf16 %v17_v8, %v15_v2  ;;  %s607_s29 = smov 126   ;;  %v139_v5 = vld [vmem:[%s736_s1] sm:$0xff]  ;;  %v145_v6 = vld [vmem:[%s736_s1 + $0x30] sm:$0xff] }
   0x5   :  { %515 = vrot.lane.b32.xlu0 %v514_v3, %s606_s28  ;;  %525 = vrot.lane.b32.xlu1 %v524_v7, %s606_s28  ;;  %v608_v14 = vmov 0.0   ;;  %s609_s0 = smov 125   ;;  %vm33_vm0 = vcmask 1039360   ;;  %vm48_vm1 = vcmask 1031168   ;;  %vm63_vm2 = vcmask 1022976   ;;  %v146_v8 = vld [vmem:[%s736_s1 + $0x38] sm:$0xff] }
   0x6   :  { %476 = vmatprep.subr.bf16.mxu0 %v475_v12  ;;  %499 = vmatprep.subr.bf16.mxu1 %v475_v12  ;;  %vm149_vm3 = vcmask 523264   ;;  %v141_v9 = vld [vmem:[%s736_s1 + $0x10] sm:$0xff]  ;;  %v148_v12 = vld [vmem:[%s736_s1 + $0x48] sm:$0xff]  ;;  %vm337_vm4 = vcmask 326656  }
   0x7   :  { %478 = vmatpush1.bf16.msra.mxu0 %v477_v13  ;;  %503 = vmatpush1.bf16.msra.mxu1 %v477_v13  ;;  %v143_v13 = vld [vmem:[%s736_s1 + $0x20] sm:$0xff] }
   0x8   :  { %244 = vmatprep.mubr.f32.mxu0 %v608_v14  ;;  %280 = vmatprep.mubr.f32.mxu1 %v608_v14 }
   0x9   :  { %520 = vrot.lane.b32.xlu0 %v519_v10, %s606_s28  ;;  %530 = vrot.lane.b32.xlu1 %v529_v11, %s606_s28 }
   0xd   :  { %535 = vrot.lane.b32.xlu0 %v514_v3, %s607_s29  ;;  %540 = vrot.lane.b32.xlu1 %v519_v10, %s607_s29 }
  0x11   :  { %545 = vrot.lane.b32.xlu0 %v524_v7, %s607_s29  ;;  %550 = vrot.lane.b32.xlu1 %v529_v11, %s607_s29 }
  0x15   :  { %555 = vrot.lane.b32.xlu0 %v514_v3, %s609_s0  ;;  %560 = vrot.lane.b32.xlu1 %v519_v10, %s609_s0  ;;  %v147_v10 = vld [vmem:[%s736_s1 + $0x40] sm:$0xff] }
  0x19   :  { %565 = vrot.lane.b32.xlu0 %v524_v7, %s609_s0  ;;  %570 = vrot.lane.b32.xlu1 %v529_v11, %s609_s0  ;;  %v140_v7 = vld [vmem:[%s736_s1 + $0x8] sm:$0xff]  ;;  %v142_v11 = vld [vmem:[%s736_s1 + $0x18] sm:$0xff] }
  0x77   :  { %v516_v15 = vpop.permute.xlu0 %515  ;;  %v526_v16 = vpop.permute.xlu1 %525 }
  0x78   :  { %v518_v17 = vunpack.i.h.bf16 %v516_v15  ;;  %v517_v18 = vunpack.i.l.bf16 %v516_v15  ;;  %v528_v19 = vunpack.i.h.bf16 %v526_v16  ;;  %v527_v20 = vunpack.i.l.bf16 %v526_v16  ;;  %v144_v15 = vld [vmem:[%s736_s1 + $0x28] sm:$0xff] }
  0x7a   :  { %v89_v27 = vsel %vm33_vm0, %v517_v18, %v518_v17  ;;  %v34_v31 = vsel %vm33_vm0, %v527_v20, %v528_v19 }
  0x7b   :  { %v521_v21 = vpop.permute.xlu0 %520  ;;  %v531_v24 = vpop.permute.xlu1 %530 }
  0x7c   :  { %v523_v22 = vunpack.i.h.bf16 %v521_v21  ;;  %v522_v23 = vunpack.i.l.bf16 %v521_v21  ;;  %v533_v25 = vunpack.i.h.bf16 %v531_v24  ;;  %v532_v26 = vunpack.i.l.bf16 %v531_v24 }
  0x7e   :  { %v90_v28 = vsel %vm33_vm0, %v522_v23, %v523_v22  ;;  %v35_v32 = vsel %vm33_vm0, %v532_v26, %v533_v25 }
  0x7f   :  { %v536_v29 = vpop.permute.xlu0 %535  ;;  %v479_v30 = vpack.c.bf16 %v90_v28, %v89_v27  ;;  %v541_v35 = vpop.permute.xlu1 %540  ;;  %v481_v36 = vpack.c.bf16 %v35_v32, %v34_v31 }
  0x80   :  { %v538_v33 = vunpack.i.h.bf16 %v536_v29  ;;  %v537_v34 = vunpack.i.l.bf16 %v536_v29  ;;  %v543_v37 = vunpack.i.h.bf16 %v541_v35  ;;  %v542_v38 = vunpack.i.l.bf16 %v541_v35 }
  0x81   :  { %480 = vmatprep.subr.bf16.mxu0 %v479_v30  ;;  %500 = vmatprep.subr.bf16.mxu1 %v479_v30 }
  0x82   :  { %482 = vmatpush1.bf16.msra.mxu0 %v481_v36  ;;  %504 = vmatpush1.bf16.msra.mxu1 %v481_v36  ;;  %v103_v39 = vsel %vm48_vm1, %v537_v34, %v538_v33  ;;  %v104_v41 = vsel %vm48_vm1, %v542_v38, %v543_v37 }
  0x83   :  { %v546_v40 = vpop.permute.xlu0 %545  ;;  %v551_v44 = vpop.permute.xlu1 %550  ;;  %v483_v45 = vpack.c.bf16 %v104_v41, %v103_v39 }
  0x84   :  { %v548_v42 = vunpack.i.h.bf16 %v546_v40  ;;  %v547_v43 = vunpack.i.l.bf16 %v546_v40  ;;  %v553_v46 = vunpack.i.h.bf16 %v551_v44  ;;  %v552_v47 = vunpack.i.l.bf16 %v551_v44 }
  0x85   :  { %484 = vmatprep.subr.bf16.mxu0 %v483_v45  ;;  %501 = vmatprep.subr.bf16.mxu1 %v483_v45 }
  0x86   :  { %v49_v48 = vsel %vm48_vm1, %v547_v43, %v548_v42  ;;  %v50_v50 = vsel %vm48_vm1, %v552_v47, %v553_v46 }
  0x87   :  { %v556_v49 = vpop.permute.xlu0 %555  ;;  %v561_v53 = vpop.permute.xlu1 %560  ;;  %v485_v54 = vpack.c.bf16 %v50_v50, %v49_v48 }
  0x88   :  { %v558_v51 = vunpack.i.h.bf16 %v556_v49  ;;  %v557_v52 = vunpack.i.l.bf16 %v556_v49  ;;  %v563_v55 = vunpack.i.h.bf16 %v561_v53  ;;  %v562_v56 = vunpack.i.l.bf16 %v561_v53 }
  0x89   :  { %486 = vmatpush1.bf16.msra.mxu0 %v485_v54  ;;  %505 = vmatpush1.bf16.msra.mxu1 %v485_v54 }
  0x8a   :  { %v117_v57 = vsel %vm63_vm2, %v557_v52, %v558_v51  ;;  %v118_v59 = vsel %vm63_vm2, %v562_v56, %v563_v55 }
  0x8b   :  { %v566_v58 = vpop.permute.xlu0 %565  ;;  %v571_v62 = vpop.permute.xlu1 %570  ;;  %v487_v63 = vpack.c.bf16 %v118_v59, %v117_v57 }
  0x8c   :  { %v568_v60 = vunpack.i.h.bf16 %v566_v58  ;;  %v567_v61 = vunpack.i.l.bf16 %v566_v58  ;;  %v573_v0 = vunpack.i.h.bf16 %v571_v62  ;;  %v572_v1 = vunpack.i.l.bf16 %v571_v62 }
  0x8d   :  { %488 = vmatprep.subr.bf16.mxu0 %v487_v63  ;;  %502 = vmatprep.subr.bf16.mxu1 %v487_v63 }
  0x8e   :  { %v64_v2 = vsel %vm63_vm2, %v567_v61, %v568_v60  ;;  %v65_v3 = vsel %vm63_vm2, %v572_v1, %v573_v0 }
  0x8f   :  { %v489_v4 = vpack.c.bf16 %v65_v3, %v64_v2 }
  0x91   :  { %490 = vmatpush1.bf16.msra.mxu0 %v489_v4  ;;  %506 = vmatpush1.bf16.msra.mxu1 %v489_v4 }
  0x94   :  { %463 = vmatmul.mubr.msk.f32.vlgmr.msra.gmra.mrb[0].mxu0 %vm149_vm3, %v139_v5  ;;  %469 = vmatmul.mubr.msk.f32.vlgmr.msra.gmra.mrb[0].mxu1 %vm149_vm3, %v145_v6  ;;  %v335_v6 = vld [vmem:[%s737_s2] sm:$0xff] }
  0x95   :  { %250 = vmatprep.mubr.f32.mxu0 %v608_v14  ;;  %286 = vmatprep.mubr.f32.mxu1 %v608_v14 }
  0x98   :  { %464 = vmatmul.mubr.msk.f32.gmra.mrb[2].mxu0 %vm149_vm3, %v140_v7  ;;  %470 = vmatmul.mubr.msk.f32.gmra.mrb[2].mxu1 %vm149_vm3, %v146_v8  ;;  %v336_v7 = vld [vmem:[%s737_s2 + $0x8] sm:$0xff]  ;;  %s610_s2 = smov [#allocation3]  }
  0x99   :  { %256 = vmatprep.mubr.f32.mxu0 %v608_v14  ;;  %292 = vmatprep.mubr.f32.mxu1 %v608_v14  ;;  %s448_s26 = sshll.u32 %s610_s2, 4  ;;  %s449_s26 = int_to_ptr.vmem [resolvable:$true] %s448_s26 }
  0x9a   :  { %s582_s27 = scalar_lea.vmem %s449_s26, 512  ;;  %p587_p1 = scmp.lt.s32.totalorder %s449_s26, %s449_s26 }
  0x9b   :  { %p583_p0 = scmp.ne.s32.totalorder %s449_s26, %s582_s27  ;;  %p588_p2 = scmp.lt.s32.totalorder %s582_s27, %s582_s27 }
  0x9c   :  { %465 = vmatmul.mubr.msk.f32.gmra.mrb[4].mxu0 %vm149_vm3, %v141_v9  ;;  %471 = vmatmul.mubr.msk.f32.gmra.mrb[4].mxu1 %vm149_vm3, %v147_v10 }
  0x9d   :  { %262 = vmatprep.mubr.f32.mxu0 %v608_v14  ;;  %298 = vmatprep.mubr.f32.mxu1 %v608_v14  ;;  %p589_p3 = por %p588_p2, %p587_p1 }
  0x9f   :  { %p590_p4 = pnand %p589_p3, %p583_p0 }
  0xa0   :  { %466 = vmatmul.mubr.msk.f32.gmra.mrb[6].mxu0 %vm149_vm3, %v142_v11  ;;  %472 = vmatmul.mubr.msk.f32.gmra.mrb[6].mxu1 %vm149_vm3, %v148_v12 }
  0xa1   :  { %268 = vmatprep.mubr.f32.mxu0 %v608_v14  ;;  %408 = vmatprep.mubr.f32.mxu1 %v608_v14 }
  0xa4   :  { %467 = vmatmul.mubr.msk.f32.gmra.mrb[8].mxu0 %vm149_vm3, %v143_v13 }
  0xa5   :  { %274 = vmatprep.mubr.f32.mxu0 %v608_v14 }
  0xa8   :  { %468 = vmatmul.mubr.msk.f32.gmra.mrb[10].mxu0 %vm149_vm3, %v144_v15 }
 0x167   :  { %v246_v16 = vpop.f32.mrb[0].mxu0  ;;  %v282_v17 = vpop.f32.mrb[0].mxu1 }
 0x168   :  { %v248_v18 = vpop.f32.mrb[1].mxu0  ;;  %v284_v19 = vpop.f32.mrb[1].mxu1  ;;  %v317_v20 = vmul.f32 %v282_v17, %v282_v17  ;;  %v305_v61 = vmul.f32 %v246_v16, %v246_v16 }
 0x169   :  { %v318_v22 = vmul.f32 %v284_v19, %v284_v19  ;;  %v306_v0 = vmul.f32 %v248_v18, %v248_v18 }
 0x16b   :  { %v252_v21 = vpop.f32.mrb[2].mxu0  ;;  %v288_v23 = vpop.f32.mrb[2].mxu1 }
 0x16c   :  { %v307_v24 = vmul.f32 %v252_v21, %v252_v21  ;;  %v254_v25 = vpop.f32.mrb[3].mxu0  ;;  %v290_v26 = vpop.f32.mrb[3].mxu1  ;;  %v319_v29 = vmul.f32 %v288_v23, %v288_v23 }
 0x16d   :  { %v308_v27 = vmul.f32 %v254_v25, %v254_v25  ;;  %v320_v32 = vmul.f32 %v290_v26, %v290_v26 }
 0x16e   :  { %v327_v28 = vadd.f32 %v317_v20, %v307_v24 }
 0x16f   :  { %v328_v30 = vadd.f32 %v318_v22, %v308_v27  ;;  %v258_v31 = vpop.f32.mrb[4].mxu0  ;;  %v294_v33 = vpop.f32.mrb[4].mxu1 }
 0x170   :  { %v309_v34 = vmul.f32 %v258_v31, %v258_v31  ;;  %v260_v35 = vpop.f32.mrb[5].mxu0  ;;  %v296_v36 = vpop.f32.mrb[5].mxu1  ;;  %v321_v39 = vmul.f32 %v294_v33, %v294_v33 }
 0x171   :  { %v310_v37 = vmul.f32 %v260_v35, %v260_v35  ;;  %v322_v42 = vmul.f32 %v296_v36, %v296_v36 }
 0x172   :  { %v329_v38 = vadd.f32 %v319_v29, %v309_v34 }
 0x173   :  { %v330_v40 = vadd.f32 %v320_v32, %v310_v37  ;;  %v264_v41 = vpop.f32.mrb[6].mxu0  ;;  %v300_v43 = vpop.f32.mrb[6].mxu1 }
 0x174   :  { %v311_v44 = vmul.f32 %v264_v41, %v264_v41  ;;  %v266_v45 = vpop.f32.mrb[7].mxu0  ;;  %v302_v46 = vpop.f32.mrb[7].mxu1  ;;  %v323_v49 = vmul.f32 %v300_v43, %v300_v43 }
 0x175   :  { %v312_v47 = vmul.f32 %v266_v45, %v266_v45  ;;  %v324_v52 = vmul.f32 %v302_v46, %v302_v46 }
 0x176   :  { %v331_v48 = vadd.f32 %v321_v39, %v311_v44 }
 0x177   :  { %v332_v50 = vadd.f32 %v322_v42, %v312_v47  ;;  %v270_v51 = vpop.f32.mrb[8].mxu0 }
 0x178   :  { %v497_v53 = vpack.c.bf16 %v331_v48, %v329_v38  ;;  %v313_v54 = vmul.f32 %v270_v51, %v270_v51  ;;  %v272_v55 = vpop.f32.mrb[9].mxu0 }
 0x179   :  { %v314_v56 = vmul.f32 %v272_v55, %v272_v55  ;;  %v495_v57 = vpack.c.bf16 %v332_v50, %v330_v40 }
 0x17a   :  { %v333_v58 = vadd.f32 %v323_v49, %v313_v54 }
 0x17b   :  { %v334_v59 = vadd.f32 %v324_v52, %v314_v56  ;;  %v276_v60 = vpop.f32.mrb[10].mxu0 }
 0x17c   :  { %v315_v62 = vmul.f32 %v276_v60, %v276_v60  ;;  %v278_v63 = vpop.f32.mrb[11].mxu0 }
 0x17d   :  { %v316_v1 = vmul.f32 %v278_v63, %v278_v63 }
 0x17e   :  { %v325_v2 = vadd.f32 %v315_v62, %v305_v61 }
 0x17f   :  { %v326_v3 = vadd.f32 %v316_v1, %v306_v0 }
 0x180   :  { %v493_v4 = vpack.c.bf16 %v327_v28, %v325_v2 }
 0x181   :  { %v491_v5 = vpack.c.bf16 %v328_v30, %v326_v3 }
 0x183   :  { %492 = vmatprep.subr.bf16.mxu1 %v491_v5 }
 0x184   :  { %494 = vmatpush1.bf16.msra.mxu1 %v493_v4 }
 0x185   :  { %496 = vmatprep.subr.bf16.mxu1 %v495_v57 }
 0x188   :  { %498 = vmatpush1.bf16.msra.mxu1 %v497_v53 }
 0x189   :  { %352 = vmatprep.subr.mxu1 %v334_v59 }
 0x18c   :  { %353 = vmatpush1.msra.mxu1 %v333_v58 }
 0x18d   :  { %473 = vmatmul.mubr.msk.f32.vlgmr.msra.gmra.mrb[8].mxu1 %vm337_vm4, %v335_v6 }
 0x18e   :  { %414 = vmatprep.mubr.f32.mxu1 %v608_v14 }
 0x191   :  { %474 = vmatmul.mubr.msk.f32.gmra.mrb[10].mxu1 %vm337_vm4, %v336_v7 }
 0x260   :  { %v410_v8 = vpop.f32.mrb[8].mxu1 }
 0x261   :  { %v411_v9 = vadd.f32 1e-05, %v410_v8  ;;  %v412_v10 = vpop.f32.mrb[9].mxu1 }
 0x262   :  { %v413_v11 = vadd.f32 1e-05, %v412_v10 }
 0x263   :  { %574 = vlog2.f32 %v411_v9 }
 0x264   :  { %576 = vlog2.f32 %v413_v11  ;;  %v416_v12 = vpop.f32.mrb[10].mxu1 }
 0x265   :  { %v417_v13 = vadd.f32 1e-05, %v416_v12  ;;  %v418_v15 = vpop.f32.mrb[11].mxu1 }
 0x266   :  { %v419_v16 = vadd.f32 1e-05, %v418_v15 }
 0x267   :  { %578 = vlog2.f32 %v417_v13 }
 0x268   :  { %580 = vlog2.f32 %v419_v16 }
 0x26d   :  { %v575_v17 = vpop.eup %574 }
 0x26e   :  { %v577_v18 = vpop.eup %576  ;;  %v422_v14 = vmul.f32 0.6931472, %v575_v17 }
 0x26f   :  { %v424_v19 = vmul.f32 0.6931472, %v577_v18 }
 0x270   :  { %v429_v20 = vadd.f32 4.5, %v422_v14 }
 0x271   :  { %v579_v21 = vpop.eup %578  ;;  %v430_v22 = vadd.f32 4.5, %v424_v19 }
 0x272   :  { %v581_v23 = vpop.eup %580  ;;  %v434_v24 = vmul.f32 0.2, %v429_v20  ;;  %v426_v25 = vmul.f32 0.6931472, %v579_v21 }
 0x273   :  { %v435_v26 = vmul.f32 0.2, %v430_v22  ;;  %v428_v27 = vmul.f32 0.6931472, %v581_v23 }
 0x274   :  { %438 = vst [vmem:[#allocation3] sm:$0xff] %v434_v24  ;;  %v431_v28 = vadd.f32 4.5, %v426_v25 }
 0x275   :  { %441 = vst [vmem:[#allocation3 + $0x10] sm:$0xff] %v435_v26  ;;  %v432_v29 = vadd.f32 4.5, %v428_v27 }
 0x276   :  { %v436_v30 = vmul.f32 0.2, %v431_v28 }
 0x277   :  { %v437_v31 = vmul.f32 0.2, %v432_v29 }
 0x278   :  { %439 = vst [vmem:[#allocation3 + $0x8] sm:$0xff] %v436_v30 }
 0x279   :  { %442 = vst [vmem:[#allocation3 + $0x18] sm:$0xff] %v437_v31 }
 0x27a   :  { %593 = shalt.err (!%p590_p4)
}
 0x27b   :  { %s594_s0 = scalar_lea.hbm %s738_s3, 512 }
 0x27c   :  { %p595_p5 = scmp.ne.s32.totalorder %s738_s3, %s594_s0  ;;  %p598_p6 = scmp.lt.u32.totalorder %s594_s0, %s738_s3 }
 0x27e   :  { %p600_p7 = pnand %p598_p6, %p595_p5 }
 0x280   :  { %603 = shalt.err (!%p600_p7)
}
 0x281   :  { %s611_s7 = smov 128   ;;  %s612_s8 = smov 8  }
 0x282   :  { %454 = dma.vmem_to_hbm [thread:$0]  %s449_s26, 512, %s738_s3, [#allocation4], %s611_s7, %s611_s7, %s612_s8  }
 0x283   :  { %604 = dma.done.wait [#allocation4], 512  }
 0x284   :  { %605 = vsyncadd [#allocation4], 4294966784 }
 0x285   :  { %458 = vsyncpa [#allocation4], 1 }

</bundles_post_ra>
